<compile_context>
chip_gen: v6e
topology: v6e:2x2x1
jax: 0.10.0
libtpu: 0.0.40
codegen_flags: <defaults>
</compile_context>

<pallas_src>
import math

import jax
import jax.numpy as jnp
from jax.experimental import pallas as pl
from jax.experimental.pallas import tpu as pltpu


_MiB = 1024 * 1024
# Below this total size use a single grid step (splitting for the two v7x
# TensorCores only adds per-step overhead).
_SINGLE_BLOCK_BYTES = 2 * _MiB
# Below this total size the Pallas launch itself is not worth it; the wrapper
# falls back to a plain (fused) XLA add.
_DEFAULT_MIN_PALLAS_BYTES = 1 * _MiB


def make_position_encoding_table(dim_model: int, max_len: int = 100) -> jnp.ndarray:
    """Builds the sinusoidal table exactly like the PyTorch __init__ (float32)."""
    if dim_model % 2 != 0:
        raise ValueError("dim_model must be even (same assumption as the PyTorch module)")
    pos = jnp.arange(0, max_len, dtype=jnp.float32)[:, None]              # [max_len, 1]
    div_term = jnp.exp(
        jnp.arange(0, dim_model, 2, dtype=jnp.float32)
        * (-math.log(10000.0) / dim_model)
    )                                                                      # [dim_model/2]
    pe = jnp.zeros((max_len, dim_model), dtype=jnp.float32)
    pe = pe.at[:, 0::2].set(jnp.sin(pos * div_term))
    pe = pe.at[:, 1::2].set(jnp.cos(pos * div_term))
    return pe


def _add_kernel(x_ref, pe_ref, o_ref):
    # Pure VPU broadcast add; pe_ref broadcasts over the leading row/batch dim.
    o_ref[...] = x_ref[...] + pe_ref[...]


def _hw_budget():
    """(target_block_bytes, vmem_limit_bytes) chosen per TPU generation."""
    cap = None
    try:
        cap = getattr(pltpu.get_tpu_info(), "vmem_capacity_bytes", None)
    except Exception:
        cap = None
    if cap is not None and cap >= 96 * _MiB:
        # v5e / v6e: 128 MiB physical VMEM -> bigger blocks, fewer grid steps.
        return 8 * _MiB, 64 * _MiB
    # v7x (64 MiB physical / 32 MiB scoped) or unknown: stay conservative.
    return 4 * _MiB, 32 * _MiB


def _sublane_multiple(itemsize: int) -> int:
    # f32 -> 8, bf16/f16 -> 16, int8/fp8 -> 32 (sub-32-bit packs along sublanes).
    return 8 * max(1, 4 // max(1, itemsize))


def _choose_tiles_flat(b: int, sd: int, itemsize: int, target_bytes: int):
    """Pick (row_tile, lane_tile) for the lane-dense flattened (b, sd) view."""
    rm = _sublane_multiple(itemsize)
    total = b * sd * itemsize
    if total <= _SINGLE_BLOCK_BYTES:
        return b, sd                                     # one grid step
    # Guarantee >= 2 blocks so both v7x TensorCores get work.
    budget = min(target_bytes, (total + 1) // 2)
    row_bytes = sd * itemsize
    tb_unit = min(b, rm)
    if tb_unit * row_bytes <= budget:
        # Keep the full lane extent (unmasked stores, pe stays resident);
        # tile rows only, in dtype-aware sublane multiples.
        tb = (budget // row_bytes) // rm * rm
        tb = max(tb_unit, min(tb, b))
        return tb, sd
    # A single row-unit block already exceeds the budget: tile lanes too.
    tl = (budget // (tb_unit * itemsize)) // 128 * 128
    tl = max(128, min(tl, sd))
    return tb_unit, tl


def _choose_seq_tile(b: int, s: int, d: int, itemsize: int, target_bytes: int) -> int:
    """Sequence tile for the 3-D (B, S, D) layout (D kept whole: lane-dense)."""
    rm = _sublane_multiple(itemsize)
    total = b * s * d * itemsize
    row_bytes = d * itemsize
    ts = (max(1, target_bytes // row_bytes) // rm) * rm
    ts = max(rm, ts)
    if b == 1 and total > _SINGLE_BLOCK_BYTES and ts >= s and s > rm:
        # Only one batch row: split the sequence so both v7x cores stream.
        ts = max(rm, (((s + 1) // 2) // rm) * rm)
    return min(ts, s)


def position_encoding_forward(
    x: jnp.ndarray,
    pe: jnp.ndarray,
    *,
    min_pallas_bytes: int = _DEFAULT_MIN_PALLAS_BYTES,
    donate_x: bool = False,
) -> jnp.ndarray:
    """Equivalent of PositionEncoding.forward: x + pe[:x.shape[1]].

    donate_x=True aliases x's HBM buffer to the output (footprint-only win);
    only enable it when x is donated at the jit boundary / not reused.
    """
    b, s, d = x.shape
    if s > pe.shape[0]:
        raise ValueError(f"sequence length {s} exceeds max_len {pe.shape[0]}")
    if d != pe.shape[1]:
        raise ValueError(f"dim_model mismatch: x has {d}, pe has {pe.shape[1]}")

    # Same-dtype add in-kernel (f32 path matches PyTorch exactly; for bf16/f16
    # inputs output stays in x.dtype rather than promoting to f32).
    pe_s = pe[:s].astype(x.dtype)
    itemsize = jnp.dtype(x.dtype).itemsize
    total_bytes = b * s * d * itemsize

    # Tiny inputs: a fused XLA add beats the pallas_call launch overhead.
    if total_bytes < min_pallas_bytes:
        return x + pe_s

    target_bytes, vmem_limit = _hw_budget()
    cost = pl.CostEstimate(
        flops=b * s * d,
        transcendentals=0,
        bytes_accessed=2 * total_bytes + s * d * itemsize,
    )
    io_alias = {0: 0} if donate_x else {}

    if b < 8 and d % 128 == 0:
        # Small batch + lane-aligned D: 3-D (1, ts, D) blocks fill all sublanes
        # (a (B, S*D) flatten with B in {1,2,4} wastes sublane capacity).
        ts = _choose_seq_tile(b, s, d, itemsize, target_bytes)
        pe3 = pe_s.reshape(1, s, d)
        grid = (b, pl.cdiv(s, ts))
        return pl.pallas_call(
            _add_kernel,
            out_shape=jax.ShapeDtypeStruct((b, s, d), x.dtype),
            grid=grid,
            in_specs=[
                pl.BlockSpec((1, ts, d), lambda bi, si: (bi, si, 0)),   # x tile
                pl.BlockSpec((1, ts, d), lambda bi, si: (0, si, 0)),    # pe (broadcast over batch)
            ],
            out_specs=pl.BlockSpec((1, ts, d), lambda bi, si: (bi, si, 0)),
            input_output_aliases=io_alias,
            cost_estimate=cost,
            compiler_params=pltpu.CompilerParams(
                dimension_semantics=("parallel", "parallel"),
                vmem_limit_bytes=vmem_limit,
            ),
        )(x, pe3)

    # General path: lane-dense flatten to (B, S*D); pe is one broadcast row.
    sd = s * d
    x2 = x.reshape(b, sd)
    pe2 = pe_s.reshape(1, sd)
    tb, tl = _choose_tiles_flat(b, sd, itemsize, target_bytes)

    if tl == sd:
        # Rows tiled only: pe's block index is constant -> DMA'd once, resident.
        grid = (pl.cdiv(b, tb),)
        out2 = pl.pallas_call(
            _add_kernel,
            out_shape=jax.ShapeDtypeStruct((b, sd), x.dtype),
            grid=grid,
            in_specs=[
                pl.BlockSpec((tb, sd), lambda i: (i, 0)),
                pl.BlockSpec((1, sd), lambda i: (0, 0)),
            ],
            out_specs=pl.BlockSpec((tb, sd), lambda i: (i, 0)),
            input_output_aliases=io_alias,
            cost_estimate=cost,
            compiler_params=pltpu.CompilerParams(
                dimension_semantics=("parallel",),
                vmem_limit_bytes=vmem_limit,
            ),
        )(x2, pe2)
    else:
        # Lanes outer / rows inner: pe's lane block index is constant across the
        # inner row axis, so it is fetched once per outer step and reused.
        grid = (pl.cdiv(sd, tl), pl.cdiv(b, tb))
        out2 = pl.pallas_call(
            _add_kernel,
            out_shape=jax.ShapeDtypeStruct((b, sd), x.dtype),
            grid=grid,
            in_specs=[
                pl.BlockSpec((tb, tl), lambda j, i: (i, j)),
                pl.BlockSpec((1, tl), lambda j, i: (0, j)),
            ],
            out_specs=pl.BlockSpec((tb, tl), lambda j, i: (i, j)),
            input_output_aliases=io_alias,
            cost_estimate=cost,
            compiler_params=pltpu.CompilerParams(
                dimension_semantics=("parallel", "parallel"),
                vmem_limit_bytes=vmem_limit,
            ),
        )(x2, pe2)

    return out2.reshape(b, s, d)


if __name__ == "__main__":
    key = jax.random.PRNGKey(0)
    k0, k1, k2, k3 = jax.random.split(key, 4)

    # --- 1) Module-spec shapes (batch=2, seq=8, dim_model=32), Pallas forced ---
    batch, seq, dim_model = 2, 8, 32
    max_len = 100
    x = jax.random.normal(k0, (batch, seq, dim_model), dtype=jnp.float32)
    pe = make_position_encoding_table(dim_model, max_len)

    out = jax.block_until_ready(position_encoding_forward(x, pe, min_pallas_bytes=0))
    ref = x + pe[:seq]
    assert out.shape == x.shape and out.dtype == x.dtype
    assert jnp.allclose(out, ref, atol=1e-6, rtol=1e-6)

    # Default wrapper takes the plain-JAX bypass for this tiny shape.
    out_bypass = jax.block_until_ready(position_encoding_forward(x, pe))
    assert jnp.allclose(out_bypass, ref, atol=1e-6, rtol=1e-6)

    # --- 2) Small batch + D % 128 == 0 -> 3-D sublane-dense layout ---
    d2 = 128
    pe128 = make_position_encoding_table(d2, max_len)
    x2 = jax.random.normal(k1, (2, 24, d2), dtype=jnp.float32)
    out2 = jax.block_until_ready(position_encoding_forward(x2, pe128, min_pallas_bytes=0))
    assert jnp.allclose(out2, x2 + pe128[:24], atol=1e-6, rtol=1e-6)

    # --- 3) Mid-size: row-tiled flat layout (pe row resident, >=2 blocks) ---
    d3 = 768
    pe768 = make_position_encoding_table(d3, max_len)
    x3 = jax.random.normal(k2, (16, 64, d3), dtype=jnp.float32)   # ~3 MiB
    out3 = jax.block_until_ready(position_encoding_forward(x3, pe768, min_pallas_bytes=0))
    assert jnp.allclose(out3, x3 + pe768[:64], atol=1e-6, rtol=1e-6)

    # --- 4) Mid-size with long rows: lane-tiled flat layout ---
    d4 = 512
    pe512 = make_position_encoding_table(d4, max_len=200)
    x4 = jax.random.normal(k3, (8, 160, d4), dtype=jnp.float32)   # ~2.6 MiB
    out4 = jax.block_until_ready(position_encoding_forward(x4, pe512, min_pallas_bytes=0))
    assert jnp.allclose(out4, x4 + pe512[:160], atol=1e-6, rtol=1e-6)

    print("KERNEL_OK")
</pallas_src>

<mosaic_0001>
module attributes {stable_mosaic.version = 11 : i64} {
  func.func @_add_kernel(%arg0: i32, %arg1: memref<2x256xf32, #tpu.memory_space<vmem>>, %arg2: memref<1x256xf32, #tpu.memory_space<vmem>>, %arg3: memref<2x256xf32, #tpu.memory_space<vmem>>) attributes {dimension_semantics = [#tpu.dimension_semantics<parallel>], iteration_bounds = array<i64: 1>, scalar_prefetch = 0 : i64, scratch_operands = 0 : i64, tpu.core_type = #tpu.core_type<tc>, window_params = [{transform_indices = @transform_0, window_bounds = array<i64: 2, 256>}, {pipeline_mode = #tpu.pipeline_mode<synchronous>, transform_indices = @transform_1, window_bounds = array<i64: 1, 256>}, {transform_indices = @transform_2, window_bounds = array<i64: 2, 256>}]} {
    %c0 = arith.constant 0 : index
    %c0_0 = arith.constant 0 : index
    %0 = vector.load %arg1[%c0, %c0_0] : memref<2x256xf32, #tpu.memory_space<vmem>>, vector<2x256xf32>
    %c0_1 = arith.constant 0 : index
    %c0_2 = arith.constant 0 : index
    %1 = vector.load %arg2[%c0_1, %c0_2] : memref<1x256xf32, #tpu.memory_space<vmem>>, vector<1x256xf32>
    %2 = vector.broadcast %1 : vector<1x256xf32> to vector<2x256xf32>
    %3 = arith.addf %0, %2 : vector<2x256xf32>
    %c0_3 = arith.constant 0 : index
    %c0_4 = arith.constant 0 : index
    %4 = vector.load %arg3[%c0_3, %c0_4] : memref<2x256xf32, #tpu.memory_space<vmem>>, vector<2x256xf32>
    tpu.vector_store %arg3[%c0_3, %c0_4], %3 {strides = array<i32>} : memref<2x256xf32, #tpu.memory_space<vmem>>, vector<2x256xf32>,
    return
  }
  func.func @transform_0(%arg0: i32) -> (i32, i32) {
    %c0_i32 = arith.constant 0 : i32
    %c0_i32_0 = arith.constant 0 : i32
    return %arg0, %c0_i32 : i32, i32
  }
  func.func @transform_1(%arg0: i32) -> (i32, i32) {
    %c0_i32 = arith.constant 0 : i32
    %c0_i32_0 = arith.constant 0 : i32
    %c0_i32_1 = arith.constant 0 : i32
    return %c0_i32, %c0_i32_0 : i32, i32
  }
  func.func @transform_2(%arg0: i32) -> (i32, i32) {
    %c0_i32 = arith.constant 0 : i32
    %c0_i32_0 = arith.constant 0 : i32
    return %arg0, %c0_i32 : i32, i32
  }
}

</mosaic_0001>

<bundles_post_ra>
// kernel: tpu_custom_call.1
= control target key start
LH: loop header
LB: loop body
LE: loop exit
PB: predicated region body
PF: predicated region fallthrough
CT: control target
= control target key end

     0   :  { %7 = vsyncpa [#allocation3], 0  ;;  %s172_s0 = inlined_call_operand.hbm [shape: f32[2,256], index: 0, kind: input, shape index: {}]   ;;  %s173_s1 = inlined_call_operand.hbm [shape: f32[1,256], index: 1, kind: input, shape index: {}]   ;;  %s174_s2 = inlined_call_operand.hbm [shape: f32[2,256], index: 2, kind: output, shape index: {}]  }
   0x1   :  { %8 = vsyncpa [#allocation6], 0 }
   0x2   :  { %9 = vsyncpa [#allocation4], 0  ;;  %s144_s9 = smov [#allocation2]   ;;  %s145_s11 = smov [#allocation5]  }
   0x3   :  { %s16_s10 = sshll.u32 %s144_s9, 4  ;;  %s26_s12 = sshll.u32 %s145_s11, 4  ;;  %s17_s10 = int_to_ptr.vmem [resolvable:$true] %s16_s10  ;;  %s27_s12 = int_to_ptr.vmem [resolvable:$true] %s26_s12 }
   0x4   :  { %s86_s13 = scalar_lea.vmem %s17_s10, 64  ;;  %p91_p1 = scmp.lt.s32.totalorder %s17_s10, %s17_s10 }
   0x5   :  { %p87_p0 = scmp.ne.s32.totalorder %s17_s10, %s86_s13  ;;  %p92_p2 = scmp.lt.s32.totalorder %s86_s13, %s86_s13 }
   0x7   :  { %p93_p3 = por %p92_p2, %p91_p1 }
   0x9   :  { %p94_p4 = pnand %p93_p3, %p87_p0 }
   0xb   :  { %97 = shalt.err (!%p94_p4)
}
   0xc   :  { %19 = dma.hbm_to_vmem [thread:$0]  %s172_s0, 64, %s17_s10, [#allocation3]  }
   0xd   :  { %s106_s16 = scalar_lea.vmem %s27_s12, 32  ;;  %p111_p6 = scmp.lt.s32.totalorder %s27_s12, %s27_s12 }
   0xe   :  { %p107_p5 = scmp.ne.s32.totalorder %s27_s12, %s106_s16  ;;  %p112_p7 = scmp.lt.s32.totalorder %s106_s16, %s106_s16 }
  0x10   :  { %p113_p8 = por %p112_p7, %p111_p6 }
  0x12   :  { %p114_p9 = pnand %p113_p8, %p107_p5 }
  0x14   :  { %117 = shalt.err (!%p114_p9)
}
  0x15   :  { %29 = dma.hbm_to_vmem [thread:$0]  %s173_s1, 32, %s27_s12, [#allocation6]  }
  0x16   :  { %138 = dma.done.wait [#allocation3], 64  }
  0x17   :  { %139 = vsyncadd [#allocation3], 4294967232 }
  0x18   :  { %140 = dma.done.wait [#allocation6], 32  }
  0x19   :  { %141 = vsyncadd [#allocation6], 4294967264  ;;  %v39_v0 = vlaneseq  ;;  %v146_v1 = vmov 1983009808   ;;  %v37_v7 = vld [vmem:[#allocation5] sm:$0x3] }
  0x1a   :  { %v49_v2 = vunpack.c.l.s4 %v146_v1  ;;  %v36_v12 = vld [vmem:[#allocation2] sm:$0xf]  ;;  %s147_s0 = smov [#allocation7]  }
  0x1b   :  { %v40_v3 = vshrl.u32 %v39_v0, 7  ;;  %s64_s19 = sshll.u32 %s147_s0, 4  ;;  %s65_s19 = int_to_ptr.vmem [resolvable:$true] %s64_s19 }
  0x1c   :  { %v50_v6 = vunpack.c.0.s8 %v49_v2  ;;  %s118_s1 = scalar_lea.vmem %s65_s19, 64  ;;  %p123_p11 = scmp.lt.s32.totalorder %s65_s19, %s65_s19 }
  0x1d   :  { %v41_v4 = vsub.s32 0, %v40_v3  ;;  %v45_v5 = vsub.s32 1, %v40_v3  ;;  %p119_p10 = scmp.ne.s32.totalorder %s65_s19, %s118_s1  ;;  %p124_p12 = scmp.lt.s32.totalorder %s118_s1, %s118_s1 }
  0x1e   :  { %v53_v10 = vsub.s32 %v50_v6, %v40_v3 }
  0x1f   :  { %v42_v8 = vrot.slane %v37_v7, %v41_v4  ;;  %v46_v9 = vrot.slane %v37_v7, %v45_v5  ;;  %p125_p13 = por %p124_p12, %p123_p11 }
  0x21   :  { %v47_v11 = vcombine.low %v42_v8, %v46_v9  ;;  %p126_p0 = pnand %p125_p13, %p119_p10 }
  0x23   :  { %v54_v13 = vrot.slane %v47_v11, %v53_v10 }
  0x25   :  { %v56_v14 = vadd.f32 %v54_v13, %v36_v12 }
  0x27   :  { %57 = vst [vmem:[#allocation7] sm:$0xf] %v56_v14 }
  0x28   :  { %129 = shalt.err (!%p126_p0)
}
  0x29   :  { %67 = dma.vmem_to_hbm [thread:$0]  %s65_s19, 64, %s174_s2, [#allocation4]  }
  0x2a   :  { %142 = dma.done.wait [#allocation4], 64  }
  0x2b   :  { %143 = vsyncadd [#allocation4], 4294967232 }
  0x2c   :  { %71 = vsyncpa [#allocation3], 1 }
  0x2d   :  { %72 = vsyncpa [#allocation6], 1 }
  0x2e   :  { %73 = vsyncpa [#allocation4], 1 }

</bundles_post_ra>
